<compile_context>
chip_gen: v7x
topology: tpu7x:2x2x1
jax: 0.10.0
libtpu: 0.0.40
codegen_flags: <defaults>
</compile_context>

<pallas_src>
import jax
import jax.numpy as jnp
from jax import lax
from jax.experimental import pallas as pl
from jax.experimental.pallas import tpu as pltpu


EPS = 1e-6
_LANES = 128
_VMEM_BUDGET = 16 * 1024 * 1024   # bytes for the 2-in + 2-out pipeline buffers
_MAX_TM = 2048
_MIN_TM = 8


def _round_up(a, b):
    return ((a + b - 1) // b) * b


def _pick_tm(n_rows, lane_width, itemsize):
    """Largest row tile (multiple of 8, <= 2048) whose 4 pipeline buffers fit
    the VMEM budget; sized at f32 width to leave room for in-kernel f32 math."""
    per_row = 4 * lane_width * max(int(itemsize), 4)
    tm = _VMEM_BUDGET // per_row
    tm = (tm // _MIN_TM) * _MIN_TM
    tm = min(tm, _MAX_TM, _round_up(n_rows, _MIN_TM))
    return max(tm, _MIN_TM)


def _ln_rows_kernel(x_ref, alpha_ref, bias_ref, o_ref):
    """Generic path: rows on sublanes, full feature vector on the lane axis."""
    x = x_ref[...].astype(jnp.float32)
    f = x.shape[-1]
    mean = jnp.mean(x, axis=-1, keepdims=True)
    diff = x - mean
    var = jnp.sum(diff * diff, axis=-1, keepdims=True) * jnp.float32(
        1.0 / max(f - 1, 1))
    inv = 1.0 / (jnp.sqrt(var) + jnp.float32(EPS))
    o_ref[...] = (alpha_ref[...] * diff * inv + bias_ref[...]).astype(o_ref.dtype)


def _ln_packed_kernel(x_ref, a_mean_ref, a_var_ref, alpha_ref, bias_ref, o_ref):
    """Lane-dense path (F < 128, 128 % F == 0): G = 128 // F rows packed per
    128-lane row.  Segmented per-group mean / unbiased variance are computed
    with two small (128, 128) matmuls on the MXU (broadcast back per lane).
    HIGHEST precision keeps the stats f32-accurate (default bf16 passes are
    not accurate enough for layer norm)."""
    x = x_ref[...].astype(jnp.float32)
    mean_b = jnp.dot(x, a_mean_ref[...],
                     precision=lax.Precision.HIGHEST,
                     preferred_element_type=jnp.float32)
    diff = x - mean_b
    var_b = jnp.dot(diff * diff, a_var_ref[...],
                    precision=lax.Precision.HIGHEST,
                    preferred_element_type=jnp.float32)
    inv = 1.0 / (jnp.sqrt(var_b) + jnp.float32(EPS))
    o_ref[...] = (alpha_ref[...] * diff * inv + bias_ref[...]).astype(o_ref.dtype)


def layer_norm_pallas(x, alpha, bias):
    """LayerNormalization over the last axis of x (any leading shape)."""
    orig_shape = x.shape
    F = orig_shape[-1]
    rows = 1
    for d in orig_shape[:-1]:
        rows *= d
    x2 = x.reshape(rows, F)
    alpha_f = alpha.astype(jnp.float32).reshape(1, F)
    bias_f = bias.astype(jnp.float32).reshape(1, F)
    cp = pltpu.CompilerParams(
        dimension_semantics=("parallel",),      # megacore sharding on v7x
        vmem_limit_bytes=32 << 20,              # v5e default (16 MiB) is too small
    )

    if F < _LANES and _LANES % F == 0:
        # ---------- lane-dense packed path ----------
        G = _LANES // F
        rows_g = _round_up(rows, G)
        if rows_g != rows:
            x2 = jnp.pad(x2, ((0, rows_g - rows), (0, 0)))
        xp = x2.reshape(rows_g // G, _LANES)
        n_packed = xp.shape[0]

        seg = jnp.arange(_LANES, dtype=jnp.int32) // F
        same = (seg[:, None] == seg[None, :]).astype(jnp.float32)
        a_mean = same / jnp.float32(F)
        a_var = same / jnp.float32(max(F - 1, 1))
        alpha_t = jnp.tile(alpha_f, (1, G))     # (1, 128)
        bias_t = jnp.tile(bias_f, (1, G))       # (1, 128)

        tm = _pick_tm(n_packed, _LANES, x.dtype.itemsize)
        n_pad = _round_up(n_packed, tm)
        if n_pad != n_packed:
            xp = jnp.pad(xp, ((0, n_pad - n_packed), (0, 0)))

        out = pl.pallas_call(
            _ln_packed_kernel,
            out_shape=jax.ShapeDtypeStruct((n_pad, _LANES), x.dtype),
            grid_spec=pltpu.PrefetchScalarGridSpec(
                num_scalar_prefetch=0,
                grid=(n_pad // tm,),
                in_specs=[
                    pl.BlockSpec((tm, _LANES), lambda i: (i, 0)),
                    pl.BlockSpec((_LANES, _LANES), lambda i: (0, 0)),
                    pl.BlockSpec((_LANES, _LANES), lambda i: (0, 0)),
                    pl.BlockSpec((1, _LANES), lambda i: (0, 0)),
                    pl.BlockSpec((1, _LANES), lambda i: (0, 0)),
                ],
                out_specs=pl.BlockSpec((tm, _LANES), lambda i: (i, 0)),
            ),
            compiler_params=cp,
        )(xp, a_mean, a_var, alpha_t, bias_t)
        out = out[:n_packed].reshape(rows_g, F)[:rows]
        return out.reshape(orig_shape)

    # ---------- generic path ----------
    tm = _pick_tm(rows, F, x.dtype.itemsize)
    n_pad = _round_up(rows, tm)
    if n_pad != rows:
        x2 = jnp.pad(x2, ((0, n_pad - rows), (0, 0)))
    out = pl.pallas_call(
        _ln_rows_kernel,
        out_shape=jax.ShapeDtypeStruct((n_pad, F), x.dtype),
        grid_spec=pltpu.PrefetchScalarGridSpec(
            num_scalar_prefetch=0,
            grid=(n_pad // tm,),
            in_specs=[
                pl.BlockSpec((tm, F), lambda i: (i, 0)),
                pl.BlockSpec((1, F), lambda i: (0, 0)),
                pl.BlockSpec((1, F), lambda i: (0, 0)),
            ],
            out_specs=pl.BlockSpec((tm, F), lambda i: (i, 0)),
        ),
        compiler_params=cp,
    )(x2, alpha_f, bias_f)
    return out[:rows].reshape(orig_shape)


def encoder_forward(x, mask, alpha, bias):
    """Encoder.forward: (empty, externally-injected) layer stack -> LayerNorm."""
    # TODO(synk): `self.layers` contents are not defined in the reference source;
    #             they are treated as identity, so `mask` is unused here.
    del mask
    return layer_norm_pallas(x, alpha, bias)


def _reference_layer_norm(x, alpha, bias):
    """Pure-JAX reference matching torch semantics (unbiased std, eps on std)."""
    x32 = x.astype(jnp.float32)
    mean = jnp.mean(x32, axis=-1, keepdims=True)
    diff = x32 - mean
    var = jnp.sum(diff * diff, axis=-1, keepdims=True) / (x.shape[-1] - 1)
    std = jnp.sqrt(var)
    return (alpha.astype(jnp.float32) * diff / (std + EPS)
            + bias.astype(jnp.float32)).astype(x.dtype)


if __name__ == "__main__":
    key = jax.random.PRNGKey(0)
    k1, k2, k3, k4 = jax.random.split(key, 4)

    # --- case 1: F < 128 -> lane-dense packed path (module-init params) ---
    B, S, F = 2, 8, 32
    x = jax.random.normal(k1, (B, S, F), dtype=jnp.float32)
    mask = jnp.ones((B, 1, S, S), dtype=jnp.float32)   # unused (identity layers)
    alpha = jnp.ones((F,), dtype=jnp.float32)
    bias = jnp.zeros((F,), dtype=jnp.float32)

    out = jax.block_until_ready(encoder_forward(x, mask, alpha, bias))
    ref = _reference_layer_norm(x, alpha, bias)
    assert out.shape == (B, S, F)
    assert jnp.allclose(out, ref, atol=2e-3, rtol=2e-3), "packed-path mismatch"

    # --- case 2: F >= 128 -> generic row path (random affine params) ---
    B2, S2, F2 = 2, 16, 128
    x2 = jax.random.normal(k2, (B2, S2, F2), dtype=jnp.float32)
    alpha2 = jax.random.normal(k3, (F2,), dtype=jnp.float32)
    bias2 = jax.random.normal(k4, (F2,), dtype=jnp.float32)
    mask2 = jnp.ones((B2, 1, S2, S2), dtype=jnp.float32)

    out2 = jax.block_until_ready(encoder_forward(x2, mask2, alpha2, bias2))
    ref2 = _reference_layer_norm(x2, alpha2, bias2)
    assert out2.shape == (B2, S2, F2)
    assert jnp.allclose(out2, ref2, atol=2e-3, rtol=2e-3), "generic-path mismatch"

    print("KERNEL_OK")
</pallas_src>

<mosaic_0001>
module attributes {stable_mosaic.version = 11 : i64} {
  func.func @_ln_packed_kernel(%arg0: i32, %arg1: memref<8x128xf32, #tpu.memory_space<vmem>>, %arg2: memref<128x128xf32, #tpu.memory_space<vmem>>, %arg3: memref<128x128xf32, #tpu.memory_space<vmem>>, %arg4: memref<1x128xf32, #tpu.memory_space<vmem>>, %arg5: memref<1x128xf32, #tpu.memory_space<vmem>>, %arg6: memref<8x128xf32, #tpu.memory_space<vmem>>) attributes {dimension_semantics = [#tpu.dimension_semantics<parallel>], iteration_bounds = array<i64: 1>, scalar_prefetch = 0 : i64, scratch_operands = 0 : i64, tpu.core_type = #tpu.core_type<tc>, window_params = [{transform_indices = @transform_0, window_bounds = array<i64: 8, 128>}, {pipeline_mode = #tpu.pipeline_mode<synchronous>, transform_indices = @transform_1, window_bounds = array<i64: 128, 128>}, {pipeline_mode = #tpu.pipeline_mode<synchronous>, transform_indices = @transform_2, window_bounds = array<i64: 128, 128>}, {pipeline_mode = #tpu.pipeline_mode<synchronous>, transform_indices = @transform_3, window_bounds = array<i64: 1, 128>}, {pipeline_mode = #tpu.pipeline_mode<synchronous>, transform_indices = @transform_4, window_bounds = array<i64: 1, 128>}, {transform_indices = @transform_5, window_bounds = array<i64: 8, 128>}]} {
    %c0 = arith.constant 0 : index
    %c0_0 = arith.constant 0 : index
    %0 = vector.load %arg1[%c0, %c0_0] : memref<8x128xf32, #tpu.memory_space<vmem>>, vector<8x128xf32>
    %c0_1 = arith.constant 0 : index
    %c0_2 = arith.constant 0 : index
    %1 = vector.load %arg2[%c0_1, %c0_2] : memref<128x128xf32, #tpu.memory_space<vmem>>, vector<128x128xf32>
    %cst = arith.constant dense<0.000000e+00> : vector<8x128xf32>
    %2 = tpu.matmul %0, %1, %cst {dimension_numbers = #tpu.dot_dimension_numbers<[1], [0], [0], [1], [0, 0, 1, 1], [], []>, precision = #tpu.contract_precision<fp32>} : vector<8x128xf32>, vector<128x128xf32>, vector<8x128xf32> -> vector<8x128xf32>
    %3 = arith.subf %0, %2 : vector<8x128xf32>
    %4 = arith.mulf %3, %3 : vector<8x128xf32>
    %c0_3 = arith.constant 0 : index
    %c0_4 = arith.constant 0 : index
    %5 = vector.load %arg3[%c0_3, %c0_4] : memref<128x128xf32, #tpu.memory_space<vmem>>, vector<128x128xf32>
    %cst_5 = arith.constant dense<0.000000e+00> : vector<8x128xf32>
    %6 = tpu.matmul %4, %5, %cst_5 {dimension_numbers = #tpu.dot_dimension_numbers<[1], [0], [0], [1], [0, 0, 1, 1], [], []>, precision = #tpu.contract_precision<fp32>} : vector<8x128xf32>, vector<128x128xf32>, vector<8x128xf32> -> vector<8x128xf32>
    %7 = math.sqrt %6 : vector<8x128xf32>
    %cst_6 = arith.constant 9.99999997E-7 : f32
    %8 = vector.broadcast %cst_6 : f32 to vector<8x128xf32>
    %9 = arith.addf %7, %8 : vector<8x128xf32>
    %cst_7 = arith.constant 1.000000e+00 : f32
    %10 = vector.broadcast %cst_7 : f32 to vector<8x128xf32>
    %11 = arith.divf %10, %9 : vector<8x128xf32>
    %c0_8 = arith.constant 0 : index
    %c0_9 = arith.constant 0 : index
    %12 = vector.load %arg4[%c0_8, %c0_9] : memref<1x128xf32, #tpu.memory_space<vmem>>, vector<1x128xf32>
    %13 = vector.broadcast %12 : vector<1x128xf32> to vector<8x128xf32>
    %14 = arith.mulf %13, %3 : vector<8x128xf32>
    %15 = arith.mulf %14, %11 : vector<8x128xf32>
    %c0_10 = arith.constant 0 : index
    %c0_11 = arith.constant 0 : index
    %16 = vector.load %arg5[%c0_10, %c0_11] : memref<1x128xf32, #tpu.memory_space<vmem>>, vector<1x128xf32>
    %17 = vector.broadcast %16 : vector<1x128xf32> to vector<8x128xf32>
    %18 = arith.addf %15, %17 : vector<8x128xf32>
    %c0_12 = arith.constant 0 : index
    %c0_13 = arith.constant 0 : index
    %19 = vector.load %arg6[%c0_12, %c0_13] : memref<8x128xf32, #tpu.memory_space<vmem>>, vector<8x128xf32>
    tpu.vector_store %arg6[%c0_12, %c0_13], %18 {strides = array<i32>} : memref<8x128xf32, #tpu.memory_space<vmem>>, vector<8x128xf32>,
    return
  }
  func.func @transform_0(%arg0: i32) -> (i32, i32) {
    %c0_i32 = arith.constant 0 : i32
    %c0_i32_0 = arith.constant 0 : i32
    return %arg0, %c0_i32 : i32, i32
  }
  func.func @transform_1(%arg0: i32) -> (i32, i32) {
    %c0_i32 = arith.constant 0 : i32
    %c0_i32_0 = arith.constant 0 : i32
    %c0_i32_1 = arith.constant 0 : i32
    return %c0_i32, %c0_i32_0 : i32, i32
  }
  func.func @transform_2(%arg0: i32) -> (i32, i32) {
    %c0_i32 = arith.constant 0 : i32
    %c0_i32_0 = arith.constant 0 : i32
    %c0_i32_1 = arith.constant 0 : i32
    return %c0_i32, %c0_i32_0 : i32, i32
  }
  func.func @transform_3(%arg0: i32) -> (i32, i32) {
    %c0_i32 = arith.constant 0 : i32
    %c0_i32_0 = arith.constant 0 : i32
    %c0_i32_1 = arith.constant 0 : i32
    return %c0_i32, %c0_i32_0 : i32, i32
  }
  func.func @transform_4(%arg0: i32) -> (i32, i32) {
    %c0_i32 = arith.constant 0 : i32
    %c0_i32_0 = arith.constant 0 : i32
    %c0_i32_1 = arith.constant 0 : i32
    return %c0_i32, %c0_i32_0 : i32, i32
  }
  func.func @transform_5(%arg0: i32) -> (i32, i32) {
    %c0_i32 = arith.constant 0 : i32
    %c0_i32_0 = arith.constant 0 : i32
    return %arg0, %c0_i32 : i32, i32
  }
}

</mosaic_0001>

<bundles_post_ra>
// kernel: tpu_custom_call.1
= control target key start
LH: loop header
LB: loop body
LE: loop exit
PB: predicated region body
PF: predicated region fallthrough
CT: control target
= control target key end

     0   :  { %10 = vsyncpa [#allocation3], 0  ;;  %s3043_s0 = inlined_call_operand.hbm [shape: f32[8,128], index: 0, kind: input, shape index: {}]   ;;  %s3044_s1 = inlined_call_operand.hbm [shape: f32[128,128], index: 1, kind: input, shape index: {}]   ;;  %s3045_s2 = inlined_call_operand.hbm [shape: f32[128,128], index: 2, kind: input, shape index: {}]   ;;  %s3046_s3 = inlined_call_operand.vmem [shape: f32[1,128], index: 3, kind: input, shape index: {}]   ;;  %s3047_s4 = inlined_call_operand.vmem [shape: f32[1,128], index: 4, kind: input, shape index: {}]   ;;  %s3048_s5 = inlined_call_operand.hbm [shape: f32[8,128], index: 5, kind: output, shape index: {}]  }
   0x1   :  { %11 = vsyncpa [#allocation6], 0 }
   0x2   :  { %12 = vsyncpa [#allocation4], 0  ;;  %s2462_s18 = smov [#allocation5]   ;;  %s2368_s22 = scalar_lea.hbm %s3044_s1, 2048 }
   0x3   :  { %s28_s19 = sshll.u32 %s2462_s18, 4  ;;  %p2369_p0 = scmp.ne.s32.totalorder %s3044_s1, %s2368_s22  ;;  %s29_s19 = int_to_ptr.vmem [resolvable:$true] %s28_s19 }
   0x4   :  { %p2372_p1 = scmp.lt.u32.totalorder %s2368_s22, %s3044_s1 }
   0x6   :  { %p2374_p2 = pnand %p2372_p1, %p2369_p0 }
   0x8   :  { %2377 = shalt.err (!%p2374_p2)
}
   0x9   :  { %s2378_s27 = scalar_lea.vmem %s29_s19, 2048  ;;  %p2383_p4 = scmp.lt.s32.totalorder %s29_s19, %s29_s19 }
   0xa   :  { %p2379_p3 = scmp.ne.s32.totalorder %s29_s19, %s2378_s27  ;;  %p2384_p5 = scmp.lt.s32.totalorder %s2378_s27, %s2378_s27 }
   0xc   :  { %p2385_p6 = por %p2384_p5, %p2383_p4 }
   0xe   :  { %p2386_p7 = pnand %p2385_p6, %p2379_p3 }
  0x10   :  { %2389 = shalt.err (!%p2386_p7)
}
  0x11   :  { %s2463_s28 = smov 128   ;;  %s2464_s29 = smov 8  }
  0x12   :  { %34 = dma.hbm_to_vmem [thread:$0]  %s3044_s1, 2048, %s29_s19, [#allocation6], %s2463_s28, %s2463_s28, %s2464_s29  }
  0x13   :  { %s2465_s7 = smov [#allocation2]   ;;  %s2466_s9 = smov [#allocation7]  }
  0x14   :  { %s19_s8 = sshll.u32 %s2465_s7, 4  ;;  %s40_s10 = sshll.u32 %s2466_s9, 4  ;;  %s20_s8 = int_to_ptr.vmem [resolvable:$true] %s19_s8  ;;  %s41_s10 = int_to_ptr.vmem [resolvable:$true] %s40_s10 }
  0x15   :  { %s2390_s13 = scalar_lea.hbm %s3043_s0, 128 }
  0x16   :  { %p2391_p8 = scmp.ne.s32.totalorder %s3043_s0, %s2390_s13  ;;  %p2394_p9 = scmp.lt.u32.totalorder %s2390_s13, %s3043_s0 }
  0x18   :  { %p2396_p10 = pnand %p2394_p9, %p2391_p8 }
  0x1a   :  { %2399 = shalt.err (!%p2396_p10)
}
  0x1b   :  { %s2400_s1 = scalar_lea.vmem %s20_s8, 128  ;;  %p2405_p12 = scmp.lt.s32.totalorder %s20_s8, %s20_s8 }
  0x1c   :  { %p2401_p11 = scmp.ne.s32.totalorder %s20_s8, %s2400_s1  ;;  %p2406_p13 = scmp.lt.s32.totalorder %s2400_s1, %s2400_s1 }
  0x1e   :  { %p2407_p0 = por %p2406_p13, %p2405_p12 }
  0x20   :  { %p2408_p1 = pnand %p2407_p0, %p2401_p11 }
  0x22   :  { %2411 = shalt.err (!%p2408_p1)
}
  0x23   :  { %22 = dma.hbm_to_vmem [thread:$0]  %s3043_s0, 128, %s20_s8, [#allocation3]  }
  0x24   :  { %s2412_s22 = scalar_lea.hbm %s3045_s2, 2048 }
  0x25   :  { %p2413_p2 = scmp.ne.s32.totalorder %s3045_s2, %s2412_s22  ;;  %p2416_p3 = scmp.lt.u32.totalorder %s2412_s22, %s3045_s2 }
  0x27   :  { %p2418_p4 = pnand %p2416_p3, %p2413_p2 }
  0x29   :  { %2421 = shalt.err (!%p2418_p4)
}
  0x2a   :  { %s2422_s27 = scalar_lea.vmem %s41_s10, 2048  ;;  %p2427_p6 = scmp.lt.s32.totalorder %s41_s10, %s41_s10 }
  0x2b   :  { %p2423_p5 = scmp.ne.s32.totalorder %s41_s10, %s2422_s27  ;;  %p2428_p7 = scmp.lt.s32.totalorder %s2422_s27, %s2422_s27 }
  0x2d   :  { %p2429_p8 = por %p2428_p7, %p2427_p6 }
  0x2f   :  { %p2430_p9 = pnand %p2429_p8, %p2423_p5 }
  0x31   :  { %2433 = shalt.err (!%p2430_p9)
}
  0x32   :  { %46 = dma.hbm_to_vmem [thread:$0]  %s3045_s2, 2048, %s41_s10, [#allocation6], %s2463_s28, %s2463_s28, %s2464_s29  }
  0x33   :  { %2456 = dma.done.wait [#allocation3], 128  }
  0x34   :  { %2457 = vsyncadd [#allocation3], 4294967168 }
  0x35   :  { %2458 = dma.done.wait [#allocation6], 4096  }
  0x36   :  { %2459 = vsyncadd [#allocation6], 4294963200  ;;  %v2467_v0 = vmov 0.0|0.0   ;;  %vm2468_vm0 = vmmov 0   ;;  %v2469_v1 = vmov 0.0   ;;  %v61_v2 = vld [vmem:[#allocation5] sm:$0xff] }
  0x37   :  { %2047 = vmatprep.subr.bf16.mxu0 %v2467_v0  ;;  %1659 = vmatprep.mubr.msk.f32.mxu0 %vm2468_vm0, %v2469_v1  ;;  %v62_v3 = vld [vmem:[#allocation5 + $0x8] sm:$0xff]  ;;  %v63_v4 = vld [vmem:[#allocation5 + $0x10] sm:$0xff]  ;;  %v78_v5 = vand.u32 4294901760, %v61_v2  ;;  %v64_v7 = vld [vmem:[#allocation5 + $0x18] sm:$0xff]  ;;  %s2470_s7 = smov [#allocation8]  }
  0x38   :  { %2191 = vmatprep.subr.bf16.mxu1 %v2467_v0  ;;  %1869 = vmatprep.mubr.msk.f32.mxu1 %vm2468_vm0, %v2469_v1  ;;  %v81_v6 = vand.u32 4294901760, %v62_v3  ;;  %v84_v8 = vand.u32 4294901760, %v63_v4  ;;  %v87_v9 = vand.u32 4294901760, %v64_v7  ;;  %v65_v10 = vld [vmem:[#allocation5 + $0x20] sm:$0xff]  ;;  %v66_v11 = vld [vmem:[#allocation5 + $0x28] sm:$0xff]  ;;  %v67_v16 = vld [vmem:[#allocation5 + $0x30] sm:$0xff] }
  0x39   :  { %v90_v14 = vand.u32 4294901760, %v65_v10  ;;  %v93_v15 = vand.u32 4294901760, %v66_v11  ;;  %v68_v17 = vld [vmem:[#allocation5 + $0x38] sm:$0xff]  ;;  %v96_v19 = vand.u32 4294901760, %v67_v16  ;;  %v69_v21 = vld [vmem:[#allocation5 + $0x40] sm:$0xff]  ;;  %v70_v22 = vld [vmem:[#allocation5 + $0x48] sm:$0xff]  ;;  %v2561_v24 = vsub.f32 %v61_v2, %v78_v5 }
  0x3a   :  { %v2549_v12 = vpack.c.bf16 %v81_v6, %v78_v5  ;;  %v2552_v13 = vpack.c.bf16 %v87_v9, %v84_v8  ;;  %v99_v20 = vand.u32 4294901760, %v68_v17  ;;  %v2559_v23 = vld [vmem:[#allocation2] sm:$0xff]  ;;  %v2563_v25 = vsub.f32 %v62_v3, %v81_v6  ;;  %v71_v29 = vld [vmem:[#allocation5 + $0x50] sm:$0xff]  ;;  %v73_v32 = vld [vmem:[#allocation5 + $0x60] sm:$0xff]  ;;  %s1411_s8 = sshll.u32 %s2470_s7, 4  ;;  %s1412_s8 = int_to_ptr.vmem [resolvable:$true] %s1411_s8 }
  0x3b   :  { %v2556_v18 = vpack.c.bf16 %v93_v15, %v90_v14  ;;  %v102_v27 = vand.u32 4294901760, %v69_v21  ;;  %v105_v28 = vand.u32 4294901760, %v70_v22  ;;  %v72_v30 = vld [vmem:[#allocation5 + $0x58] sm:$0xff]  ;;  %v2570_v31 = vand.u32 4294901760, %v2559_v23  ;;  %v74_v35 = vld [vmem:[#allocation5 + $0x68] sm:$0xff]  ;;  %v75_v36 = vld [vmem:[#allocation5 + $0x70] sm:$0xff]  ;;  %p2439_p11 = scmp.lt.s32.totalorder %s1412_s8, %s1412_s8 }
  0x3c   :  { %2049 = vmatpush3.bf16.msra.mxu0 %v2549_v12  ;;  %v2566_v26 = vpack.c.bf16 %v99_v20, %v96_v19  ;;  %v2572_v33 = vsub.f32 %v63_v4, %v84_v8  ;;  %v108_v34 = vand.u32 4294901760, %v71_v29  ;;  %v76_v37 = vld [vmem:[#allocation5 + $0x78] sm:$0xff]  ;;  %v111_v39 = vand.u32 4294901760, %v72_v30  ;;  %s2434_s9 = scalar_lea.vmem %s1412_s8, 128 }
  0x3d   :  { %2050 = vmatprep.subr.bf16.mxu0 %v2467_v0  ;;  %v2575_v38 = vpack.c.bf16 %v105_v28, %v102_v27  ;;  %v171_v40 = vand.u32 4294901760, %v2561_v24  ;;  %v178_v41 = vand.u32 4294901760, %v2563_v25  ;;  %v2579_v42 = vsub.f32 %v64_v7, %v87_v9  ;;  %p2435_p10 = scmp.ne.s32.totalorder %s1412_s8, %s2434_s9  ;;  %p2440_p12 = scmp.lt.s32.totalorder %s2434_s9, %s2434_s9 }
  0x3e   :  { %v2581_v43 = vsub.f32 %v65_v10, %v90_v14  ;;  %v2583_v44 = vsub.f32 %v66_v11, %v93_v15  ;;  %v2588_v45 = vsub.f32 %v2559_v23, %v2570_v31  ;;  %v114_v46 = vand.u32 4294901760, %v73_v32 }
  0x3f   :  { %v117_v47 = vand.u32 4294901760, %v74_v35  ;;  %v120_v48 = vand.u32 4294901760, %v75_v36  ;;  %v123_v49 = vand.u32 4294901760, %v76_v37  ;;  %v2590_v50 = vsub.f32 %v67_v16, %v96_v19  ;;  %p2441_p13 = por %p2440_p12, %p2439_p11 }
  0x40   :  { %2052 = vmatpush3.bf16.msra.mxu0 %v2552_v13  ;;  %v2592_v51 = vsub.f32 %v68_v17, %v99_v20  ;;  %v2594_v52 = vsub.f32 %v69_v21, %v102_v27  ;;  %v185_v53 = vand.u32 4294901760, %v2572_v33  ;;  %v2598_v54 = vsub.f32 %v70_v22, %v105_v28 }
  0x41   :  { %2053 = vmatprep.subr.bf16.mxu0 %v2467_v0  ;;  %v2600_v55 = vpack.c.bf16 %v111_v39, %v108_v34  ;;  %v172_v56 = vsub.f32 %v2561_v24, %v171_v40  ;;  %v179_v57 = vsub.f32 %v2563_v25, %v178_v41  ;;  %v2605_v58 = vsub.f32 %v71_v29, %v108_v34  ;;  %p2442_p0 = pnand %p2441_p13, %p2435_p10 }
  0x42   :  { %v2607_v59 = vsub.f32 %v72_v30, %v111_v39  ;;  %v2609_v60 = vsub.f32 %v73_v32, %v114_v46  ;;  %v3049_v61 = vand.u32 4294901760, %v2588_v45  ;;  %v2612_v62 = vpack.c.bf16 %v117_v47, %v114_v46 }
  0x43   :  { %v2614_v63 = vsub.f32 %v74_v35, %v117_v47  ;;  %v2616_v2 = vpack.c.bf16 %v123_v49, %v120_v48  ;;  %v2618_v3 = vsub.f32 %v75_v36, %v120_v48  ;;  %v2620_v4 = vsub.f32 %v76_v37, %v123_v49 }
  0x44   :  { %2055 = vmatpush3.bf16.msra.mxu0 %v2556_v18  ;;  %v186_v5 = vsub.f32 %v2572_v33, %v185_v53  ;;  %v192_v6 = vand.u32 4294901760, %v2579_v42  ;;  %v199_v7 = vand.u32 4294901760, %v2581_v43  ;;  %v173_v8 = vand.u32 4294901760, %v172_v56 }
  0x45   :  { %2056 = vmatprep.subr.bf16.mxu0 %v2467_v0  ;;  %v180_v9 = vand.u32 4294901760, %v179_v57  ;;  %v206_v10 = vand.u32 4294901760, %v2583_v44  ;;  %v213_v11 = vand.u32 4294901760, %v2590_v50  ;;  %v161_v14 = vsub.f32 %v2588_v45, %v3049_v61 }
  0x46   :  { %v220_v15 = vand.u32 4294901760, %v2592_v51  ;;  %v227_v16 = vand.u32 4294901760, %v2594_v52  ;;  %v234_v17 = vand.u32 4294901760, %v2598_v54  ;;  %v241_v19 = vand.u32 4294901760, %v2605_v58 }
  0x47   :  { %v248_v20 = vand.u32 4294901760, %v2607_v59  ;;  %v255_v21 = vand.u32 4294901760, %v2609_v60  ;;  %v262_v22 = vand.u32 4294901760, %v2614_v63  ;;  %v269_v27 = vand.u32 4294901760, %v2618_v3 }
  0x48   :  { %2058 = vmatpush3.bf16.msra.mxu0 %v2566_v26  ;;  %v276_v28 = vand.u32 4294901760, %v2620_v4  ;;  %v2641_v29 = vpack.c.bf16 %v178_v41, %v171_v40  ;;  %v2643_v30 = vpack.c.bf16 %v192_v6, %v185_v53  ;;  %v193_v32 = vsub.f32 %v2579_v42, %v192_v6 }
  0x49   :  { %2059 = vmatprep.subr.bf16.mxu0 %v2467_v0  ;;  %v2647_v34 = vpack.c.bf16 %v206_v10, %v199_v7  ;;  %v2649_v35 = vpack.c.bf16 %v220_v15, %v213_v11  ;;  %v2651_v36 = vpack.c.bf16 %v234_v17, %v227_v16  ;;  %v2654_v37 = vpack.c.bf16 %v248_v20, %v241_v19 }
  0x4a   :  { %v2656_v39 = vpack.c.bf16 %v262_v22, %v255_v21  ;;  %v2658_v40 = vpack.c.bf16 %v276_v28, %v269_v27  ;;  %v162_v41 = vand.u32 4294901760, %v161_v14  ;;  %v187_v46 = vand.u32 4294901760, %v186_v5 }
  0x4b   :  { %v2072_v47 = vpack.c.bf16 %v180_v9, %v173_v8  ;;  %v194_v48 = vand.u32 4294901760, %v193_v32  ;;  %v200_v49 = vsub.f32 %v2581_v43, %v199_v7  ;;  %v207_v53 = vsub.f32 %v2583_v44, %v206_v10 }
  0x4c   :  { %2061 = vmatpush3.bf16.msra.mxu0 %v2575_v38  ;;  %v214_v56 = vsub.f32 %v2590_v50, %v213_v11  ;;  %v221_v14 = vsub.f32 %v2592_v51, %v220_v15  ;;  %v228_v5 = vsub.f32 %v2594_v52, %v227_v16  ;;  %v235_v10 = vsub.f32 %v2598_v54, %v234_v17 }
  0x4d   :  { %2062 = vmatprep.subr.bf16.mxu0 %v2467_v0  ;;  %v2075_v57 = vpack.c.bf16 %v194_v48, %v187_v46  ;;  %v201_v6 = vand.u32 4294901760, %v200_v49  ;;  %v208_v61 = vand.u32 4294901760, %v207_v53  ;;  %v242_v15 = vsub.f32 %v2605_v58, %v241_v19 }
  0x4e   :  { %v215_v8 = vand.u32 4294901760, %v214_v56  ;;  %v222_v9 = vand.u32 4294901760, %v221_v14  ;;  %v229_v11 = vand.u32 4294901760, %v228_v5  ;;  %v249_v46 = vsub.f32 %v2607_v59, %v248_v20  ;;  %v722_v5 = vld [vmem:[#allocation7 + $0x10] sm:$0xff] }
  0x4f   :  { %v2078_v7 = vpack.c.bf16 %v208_v61, %v201_v6  ;;  %v256_v16 = vsub.f32 %v2609_v60, %v255_v21  ;;  %v263_v17 = vsub.f32 %v2614_v63, %v262_v22  ;;  %v270_v19 = vsub.f32 %v2618_v3, %v269_v27  ;;  %v720_v27 = vld [vmem:[#allocation7] sm:$0xff] }
  0x50   :  { %2064 = vmatpush3.bf16.msra.mxu0 %v2600_v55  ;;  %v2081_v32 = vpack.c.bf16 %v222_v9, %v215_v8  ;;  %v250_v48 = vand.u32 4294901760, %v249_v46  ;;  %v277_v20 = vsub.f32 %v2620_v4, %v276_v28  ;;  %v2096_v14 = vpack.c.bf16 %v2563_v25, %v2561_v24  ;;  %v721_v28 = vld [vmem:[#allocation7 + $0x8] sm:$0xff]  ;;  %v726_v46 = vld [vmem:[#allocation7 + $0x30] sm:$0xff] }
  0x51   :  { %2065 = vmatprep.subr.bf16.mxu0 %v2467_v0  ;;  %v257_v49 = vand.u32 4294901760, %v256_v16  ;;  %v264_v56 = vand.u32 4294901760, %v263_v17  ;;  %v737_v8 = vand.u32 4294901760, %v720_v27  ;;  %v740_v9 = vand.u32 4294901760, %v721_v28  ;;  %v725_v24 = vld [vmem:[#allocation7 + $0x28] sm:$0xff]  ;;  %v727_v16 = vld [vmem:[#allocation7 + $0x38] sm:$0xff] }
  0x52   :  { %v278_v6 = vand.u32 4294901760, %v277_v20  ;;  %v729_v17 = vld [vmem:[#allocation7 + $0x48] sm:$0xff] }
  0x53   :  { %v2090_v21 = vpack.c.bf16 %v264_v56, %v257_v49  ;;  %v2102_v49 = vpack.c.bf16 %v2583_v44, %v2581_v43 }
  0x54   :  { %2067 = vmatpush3.bf16.msra.mxu0 %v2612_v62 }
  0x55   :  { %2068 = vmatprep.subr.bf16.mxu0 %v2467_v0 }
  0x58   :  { %2070 = vmatpush3.bf16.msra.mxu0 %v2616_v2 }
  0x59   :  { %2071 = vmatprep.subr.bf16.mxu0 %v2467_v0 }
  0x5b   :  { %1660 = vmatmul.mubr.f32.vlgmr.msra.gmra.mrb[0].mxu0 %v162_v41  ;;  %v236_v41 = vand.u32 4294901760, %v235_v10  ;;  %v723_v10 = vld [vmem:[#allocation7 + $0x18] sm:$0xff] }
  0x5c   :  { %2073 = vmatpush3.bf16.msra.mxu0 %v2072_v47  ;;  %1694 = vmatprep.mubr.msk.f32.mxu0 %vm2468_vm0, %v2469_v1  ;;  %v243_v47 = vand.u32 4294901760, %v242_v15  ;;  %v746_v25 = vand.u32 4294901760, %v723_v10  ;;  %v752_v15 = vand.u32 4294901760, %v725_v24 }
  0x5d   :  { %2074 = vmatprep.subr.bf16.mxu0 %v2467_v0  ;;  %v2084_v61 = vpack.c.bf16 %v236_v41, %v229_v11  ;;  %v743_v11 = vand.u32 4294901760, %v722_v5 }
  0x5e   :  { %v2087_v53 = vpack.c.bf16 %v250_v48, %v243_v47  ;;  %v2692_v47 = vpack.c.bf16 %v740_v9, %v737_v8  ;;  %v2704_v56 = vsub.f32 %v723_v10, %v746_v25  ;;  %v2709_v20 = vsub.f32 %v725_v24, %v752_v15 }
  0x5f   :  { %v2698_v48 = vsub.f32 %v722_v5, %v743_v11 }
  0x60   :  { %2076 = vmatpush3.bf16.msra.mxu0 %v2075_v57  ;;  %v271_v57 = vand.u32 4294901760, %v270_v19  ;;  %2193 = vmatpush3.bf16.msra.mxu1 %v2692_v47  ;;  %v851_v24 = vand.u32 4294901760, %v2704_v56 }
  0x61   :  { %2077 = vmatprep.subr.bf16.mxu0 %v2467_v0  ;;  %2194 = vmatprep.subr.bf16.mxu1 %v2467_v0 }
  0x62   :  { %v2093_v22 = vpack.c.bf16 %v278_v6, %v271_v57  ;;  %v758_v57 = vand.u32 4294901760, %v727_v16 }
  0x64   :  { %2079 = vmatpush3.bf16.msra.mxu0 %v2078_v7  ;;  %v2099_v7 = vpack.c.bf16 %v2579_v42, %v2572_v33  ;;  %v2694_v33 = vsub.f32 %v720_v27, %v737_v8  ;;  %v2696_v42 = vsub.f32 %v721_v28, %v740_v9  ;;  %v2715_v44 = vsub.f32 %v727_v16, %v758_v57 }
  0x65   :  { %2080 = vmatprep.subr.bf16.mxu0 %v2467_v0  ;;  %v2105_v28 = vpack.c.bf16 %v2592_v51, %v2590_v50  ;;  %v2111_v50 = vpack.c.bf16 %v2607_v59, %v2605_v58  ;;  %v3054_v58 = vand.u32 4294901760, %v2588_v45  ;;  %v733_v59 = vld [vmem:[#allocation7 + $0x68] sm:$0xff] }
  0x68   :  { %2082 = vmatpush3.bf16.msra.mxu0 %v2081_v32  ;;  %v724_v32 = vld [vmem:[#allocation7 + $0x20] sm:$0xff] }
  0x69   :  { %2083 = vmatprep.subr.bf16.mxu0 %v2467_v0  ;;  %v749_v41 = vand.u32 4294901760, %v724_v32 }
  0x6b   :  { %v2706_v19 = vsub.f32 %v724_v32, %v749_v41  ;;  %v2724_v5 = vpack.c.bf16 %v752_v15, %v749_v41  ;;  %v844_v32 = vand.u32 4294901760, %v2698_v48  ;;  %v852_v15 = vsub.f32 %v2704_v56, %v851_v24 }
  0x6c   :  { %2085 = vmatpush3.bf16.msra.mxu0 %v2084_v61  ;;  %v728_v61 = vld [vmem:[#allocation7 + $0x40] sm:$0xff] }
  0x6d   :  { %2086 = vmatprep.subr.bf16.mxu0 %v2467_v0  ;;  %v761_v6 = vand.u32 4294901760, %v728_v61  ;;  %v845_v41 = vsub.f32 %v2698_v48, %v844_v32 }
  0x6f   :  { %v846_v16 = vand.u32 4294901760, %v845_v41 }
  0x70   :  { %2088 = vmatpush3.bf16.msra.mxu0 %v2087_v53  ;;  %v2702_v53 = vpack.c.bf16 %v746_v25, %v743_v11 }
  0x71   :  { %2089 = vmatprep.subr.bf16.mxu0 %v2467_v0 }
  0x72   :  { %2196 = vmatpush3.bf16.msra.mxu1 %v2702_v53 }
  0x73   :  { %2197 = vmatprep.subr.bf16.mxu1 %v2467_v0 }
  0x74   :  { %2091 = vmatpush3.bf16.msra.mxu0 %v2090_v21  ;;  %v755_v21 = vand.u32 4294901760, %v726_v46 }
  0x75   :  { %2092 = vmatprep.subr.bf16.mxu0 %v2467_v0 }
  0x76   :  { %v2713_v43 = vsub.f32 %v726_v46, %v755_v21  ;;  %2199 = vmatpush3.bf16.msra.mxu1 %v2724_v5  ;;  %v2731_v8 = vpack.c.bf16 %v758_v57, %v755_v21 }
  0x77   :  { %2200 = vmatprep.subr.bf16.mxu1 %v2467_v0 }
  0x78   :  { %2094 = vmatpush3.bf16.msra.mxu0 %v2093_v22  ;;  %v764_v22 = vand.u32 4294901760, %v729_v17 }
  0x79   :  { %2095 = vmatprep.subr.bf16.mxu0 %v2467_v0 }
  0x7a   :  { %v2719_v27 = vsub.f32 %v729_v17, %v764_v22  ;;  %2202 = vmatpush3.bf16.msra.mxu1 %v2731_v8  ;;  %v2738_v51 = vpack.c.bf16 %v764_v22, %v761_v6  ;;  %v858_v17 = vand.u32 4294901760, %v2706_v19 }
  0x7b   :  { %1695 = vmatmul.mubr.f32.vlgmr.msra.gmra.mrb[0].mxu0 %v2570_v31  ;;  %2203 = vmatprep.subr.bf16.mxu1 %v2467_v0 }
  0x7c   :  { %2097 = vmatpush3.bf16.msra.mxu0 %v2096_v14  ;;  %1729 = vmatprep.mubr.msk.f32.mxu0 %vm2468_vm0, %v2469_v1  ;;  %v2717_v14 = vsub.f32 %v728_v61, %v761_v6  ;;  %v853_v61 = vand.u32 4294901760, %v852_v15  ;;  %v859_v57 = vsub.f32 %v2706_v19, %v858_v17 }
  0x7d   :  { %2098 = vmatprep.subr.bf16.mxu0 %v2467_v0 }
  0x7e   :  { %2205 = vmatpush3.bf16.msra.mxu1 %v2738_v51  ;;  %v2219_v21 = vpack.c.bf16 %v853_v61, %v846_v16  ;;  %v860_v22 = vand.u32 4294901760, %v859_v57 }
  0x7f   :  { %2206 = vmatprep.subr.bf16.mxu1 %v2467_v0 }
  0x80   :  { %2100 = vmatpush3.bf16.msra.mxu0 %v2099_v7  ;;  %v2108_v7 = vpack.c.bf16 %v2598_v54, %v2594_v52  ;;  %v2114_v52 = vpack.c.bf16 %v2614_v63, %v2609_v60  ;;  %v2117_v54 = vpack.c.bf16 %v2620_v4, %v2618_v3  ;;  %v776_v60 = vand.u32 4294901760, %v733_v59  ;;  %v734_v63 = vld [vmem:[#allocation7 + $0x70] sm:$0xff] }
  0x81   :  { %2101 = vmatprep.subr.bf16.mxu0 %v2467_v0 }
  0x84   :  { %2103 = vmatpush3.bf16.msra.mxu0 %v2102_v49  ;;  %v865_v49 = vand.u32 4294901760, %v2709_v20 }
  0x85   :  { %2104 = vmatprep.subr.bf16.mxu0 %v2467_v0 }
  0x86   :  { %v866_v6 = vsub.f32 %v2709_v20, %v865_v49 }
  0x88   :  { %2106 = vmatpush3.bf16.msra.mxu0 %v2105_v28  ;;  %v867_v28 = vand.u32 4294901760, %v866_v6 }
  0x89   :  { %2107 = vmatprep.subr.bf16.mxu0 %v2467_v0 }
  0x8c   :  { %2109 = vmatpush3.bf16.msra.mxu0 %v2108_v7  ;;  %v872_v7 = vand.u32 4294901760, %v2713_v43 }
  0x8d   :  { %2110 = vmatprep.subr.bf16.mxu0 %v2467_v0 }
  0x90   :  { %2112 = vmatpush3.bf16.msra.mxu0 %v2111_v50  ;;  %v879_v50 = vand.u32 4294901760, %v2715_v44 }
  0x91   :  { %2113 = vmatprep.subr.bf16.mxu0 %v2467_v0 }
  0x94   :  { %2115 = vmatpush3.bf16.msra.mxu0 %v2114_v52  ;;  %v2222_v52 = vpack.c.bf16 %v867_v28, %v860_v22 }
  0x95   :  { %2116 = vmatprep.subr.bf16.mxu0 %v2467_v0 }
  0x98   :  { %2118 = vmatpush3.bf16.msra.mxu0 %v2117_v54  ;;  %v873_v54 = vsub.f32 %v2713_v43, %v872_v7 }
  0x99   :  { %2119 = vmatprep.subr.bf16.mxu0 %v2467_v0 }
  0x9b   :  { %1730 = vmatmul.mubr.f32.vlgmr.msra.gmra.mrb[0].mxu0 %v2588_v45 }
  0x9c   :  { %2121 = vmatpush3.bf16.msra.mxu0 %v2549_v12  ;;  %1764 = vmatprep.mubr.msk.f32.mxu0 %vm2468_vm0, %v2469_v1 }
  0x9d   :  { %2122 = vmatprep.subr.bf16.mxu0 %v2467_v0 }
  0xa0   :  { %2124 = vmatpush3.bf16.msra.mxu0 %v2552_v13 }
  0xa1   :  { %2125 = vmatprep.subr.bf16.mxu0 %v2467_v0 }
  0xa4   :  { %2127 = vmatpush3.bf16.msra.mxu0 %v2556_v18 }
  0xa5   :  { %2128 = vmatprep.subr.bf16.mxu0 %v2467_v0 }
  0xa8   :  { %2130 = vmatpush3.bf16.msra.mxu0 %v2566_v26 }
  0xa9   :  { %2131 = vmatprep.subr.bf16.mxu0 %v2467_v0 }
  0xac   :  { %2133 = vmatpush3.bf16.msra.mxu0 %v2575_v38 }
  0xad   :  { %2134 = vmatprep.subr.bf16.mxu0 %v2467_v0 }
  0xb0   :  { %2136 = vmatpush3.bf16.msra.mxu0 %v2600_v55 }
  0xb1   :  { %2137 = vmatprep.subr.bf16.mxu0 %v2467_v0 }
  0xb4   :  { %2139 = vmatpush3.bf16.msra.mxu0 %v2612_v62 }
  0xb5   :  { %2140 = vmatprep.subr.bf16.mxu0 %v2467_v0 }
  0xb8   :  { %2142 = vmatpush3.bf16.msra.mxu0 %v2616_v2 }
  0xb9   :  { %2143 = vmatprep.subr.bf16.mxu0 %v2467_v0 }
  0xbb   :  { %1765 = vmatmul.mubr.f32.vlgmr.msra.gmra.mrb[0].mxu0 %v3054_v58  ;;  %v880_v58 = vsub.f32 %v2715_v44, %v879_v50 }
  0xbc   :  { %2145 = vmatpush3.bf16.msra.mxu0 %v2641_v29  ;;  %1799 = vmatprep.mubr.msk.f32.mxu0 %vm2468_vm0, %v2469_v1  ;;  %v2822_v29 = vsub.f32 %v733_v59, %v776_v60 }
  0xbd   :  { %2146 = vmatprep.subr.bf16.mxu0 %v2467_v0 }
  0xbe   :  { %v3052_v15 = vand.u32 4294901760, %v2822_v29 }
  0xc0   :  { %2148 = vmatpush3.bf16.msra.mxu0 %v2643_v30  ;;  %v779_v30 = vand.u32 4294901760, %v734_v63  ;;  %v922_v57 = vsub.f32 %v2822_v29, %v3052_v15 }
  0xc1   :  { %2149 = vmatprep.subr.bf16.mxu0 %v2467_v0 }
  0xc2   :  { %v923_v22 = vand.u32 4294901760, %v922_v57 }
  0xc4   :  { %2151 = vmatpush3.bf16.msra.mxu0 %v2647_v34 }
  0xc5   :  { %2152 = vmatprep.subr.bf16.mxu0 %v2467_v0 }
  0xc8   :  { %2154 = vmatpush3.bf16.msra.mxu0 %v2649_v35  ;;  %v830_v35 = vand.u32 4294901760, %v2694_v33 }
  0xc9   :  { %2155 = vmatprep.subr.bf16.mxu0 %v2467_v0 }
  0xca   :  { %v831_v9 = vsub.f32 %v2694_v33, %v830_v35 }
  0xcc   :  { %2157 = vmatpush3.bf16.msra.mxu0 %v2651_v36  ;;  %v837_v36 = vand.u32 4294901760, %v2696_v42  ;;  %v832_v11 = vand.u32 4294901760, %v831_v9 }
  0xcd   :  { %2158 = vmatprep.subr.bf16.mxu0 %v2467_v0 }
  0xce   :  { %v838_v10 = vsub.f32 %v2696_v42, %v837_v36 }
  0xd0   :  { %2160 = vmatpush3.bf16.msra.mxu0 %v2654_v37  ;;  %v839_v25 = vand.u32 4294901760, %v838_v10 }
  0xd1   :  { %2161 = vmatprep.subr.bf16.mxu0 %v2467_v0 }
  0xd2   :  { %v2849_v46 = vpack.c.bf16 %v839_v25, %v832_v11 }
  0xd4   :  { %2163 = vmatpush3.bf16.msra.mxu0 %v2656_v39  ;;  %v2829_v39 = vsub.f32 %v734_v63, %v779_v30 }
  0xd5   :  { %2164 = vmatprep.subr.bf16.mxu0 %v2467_v0 }
  0xd6   :  { %v3051_v28 = vand.u32 4294901760, %v2829_v39 }
  0xd8   :  { %2166 = vmatpush3.bf16.msra.mxu0 %v2658_v40 }
  0xd9   :  { %2167 = vmatprep.subr.bf16.mxu0 %v2467_v0 }
  0xdb   :  { %1800 = vmatmul.mubr.f32.vlgmr.msra.gmra.mrb[0].mxu0 %v2570_v31 }
  0xdc   :  { %2169 = vmatpush3.bf16.msra.mxu0 %v2549_v12  ;;  %1834 = vmatprep.mubr.msk.f32.mxu0 %vm2468_vm0, %v2469_v1  ;;  %v730_v12 = vld [vmem:[#allocation7 + $0x50] sm:$0xff] }
  0xdd   :  { %2170 = vmatprep.subr.bf16.mxu0 %v2467_v0 }
  0xe0   :  { %2172 = vmatpush3.bf16.msra.mxu0 %v2552_v13  ;;  %v731_v13 = vld [vmem:[#allocation7 + $0x58] sm:$0xff] }
  0xe1   :  { %2173 = vmatprep.subr.bf16.mxu0 %v2467_v0 }
  0xe4   :  { %2175 = vmatpush3.bf16.msra.mxu0 %v2556_v18  ;;  %v767_v18 = vand.u32 4294901760, %v730_v12 }
  0xe5   :  { %2176 = vmatprep.subr.bf16.mxu0 %v2467_v0 }
  0xe6   :  { %v2815_v3 = vsub.f32 %v730_v12, %v767_v18  ;;  %v874_v12 = vand.u32 4294901760, %v873_v54 }
  0xe8   :  { %2178 = vmatpush3.bf16.msra.mxu0 %v2566_v26  ;;  %v770_v26 = vand.u32 4294901760, %v731_v13 }
  0xe9   :  { %2179 = vmatprep.subr.bf16.mxu0 %v2467_v0 }
  0xea   :  { %v2809_v45 = vpack.c.bf16 %v770_v26, %v767_v18  ;;  %v886_v18 = vand.u32 4294901760, %v2717_v14 }
  0xec   :  { %2181 = vmatpush3.bf16.msra.mxu0 %v2575_v38  ;;  %v732_v38 = vld [vmem:[#allocation7 + $0x60] sm:$0xff]  ;;  %2208 = vmatpush3.bf16.msra.mxu1 %v2809_v45  ;;  %v887_v59 = vsub.f32 %v2717_v14, %v886_v18 }
  0xed   :  { %2182 = vmatprep.subr.bf16.mxu0 %v2467_v0  ;;  %2209 = vmatprep.subr.bf16.mxu1 %v2467_v0 }
  0xf0   :  { %2184 = vmatpush3.bf16.msra.mxu0 %v2600_v55  ;;  %v773_v55 = vand.u32 4294901760, %v732_v38 }
  0xf1   :  { %2185 = vmatprep.subr.bf16.mxu0 %v2467_v0 }
  0xf2   :  { %v2820_v4 = vsub.f32 %v732_v38, %v773_v55 }
  0xf4   :  { %2187 = vmatpush3.bf16.msra.mxu0 %v2612_v62  ;;  %v2813_v62 = vpack.c.bf16 %v776_v60, %v773_v55  ;;  %v888_v60 = vand.u32 4294901760, %v887_v59  ;;  %v3053_v41 = vand.u32 4294901760, %v2820_v4  ;;  %v2258_v57 = vpack.c.bf16 %v2822_v29, %v2820_v4 }
  0xf5   :  { %2188 = vmatprep.subr.bf16.mxu0 %v2467_v0 }
  0xf6   :  { %2211 = vmatpush3.bf16.msra.mxu1 %v2813_v62  ;;  %v915_v61 = vsub.f32 %v2820_v4, %v3053_v41 }
  0xf7   :  { %2212 = vmatprep.subr.bf16.mxu1 %v2467_v0 }
  0xf8   :  { %2190 = vmatpush3.bf16.msra.mxu0 %v2616_v2  ;;  %v735_v2 = vld [vmem:[#allocation7 + $0x78] sm:$0xff]  ;;  %v916_v6 = vand.u32 4294901760, %v915_v61 }
  0xf9   :  { %v782_v34 = vand.u32 4294901760, %v735_v2 }
  0xfb   :  { %1835 = vmatmul.mubr.f32.vlgmr.msra.gmra.mrb[0].mxu0 %v2570_v31  ;;  %v2817_v31 = vsub.f32 %v731_v13, %v770_v26  ;;  %v2827_v37 = vpack.c.bf16 %v782_v34, %v779_v30  ;;  %v2831_v40 = vsub.f32 %v735_v2, %v782_v34  ;;  %v881_v13 = vand.u32 4294901760, %v880_v58 }
  0xfc   :  { %v893_v26 = vand.u32 4294901760, %v2719_v27  ;;  %v900_v2 = vand.u32 4294901760, %v2815_v3  ;;  %v2234_v58 = vpack.c.bf16 %v923_v22, %v916_v6 }
  0xfd   :  { %2214 = vmatpush3.bf16.msra.mxu1 %v2827_v37  ;;  %v2225_v38 = vpack.c.bf16 %v881_v13, %v874_v12  ;;  %v907_v30 = vand.u32 4294901760, %v2817_v31  ;;  %v3050_v54 = vand.u32 4294901760, %v2831_v40  ;;  %v929_v12 = vsub.f32 %v2829_v39, %v3051_v28 }
  0xfe   :  { %2215 = vmatprep.subr.bf16.mxu1 %v2467_v0  ;;  %v894_v55 = vsub.f32 %v2719_v27, %v893_v26  ;;  %v901_v9 = vsub.f32 %v2815_v3, %v900_v2  ;;  %v2255_v61 = vpack.c.bf16 %v2817_v31, %v2815_v3  ;;  %v2261_v6 = vpack.c.bf16 %v2831_v40, %v2829_v39 }
  0xff   :  { %v908_v10 = vsub.f32 %v2817_v31, %v907_v30  ;;  %v936_v13 = vsub.f32 %v2831_v40, %v3050_v54  ;;  %v930_v59 = vand.u32 4294901760, %v929_v12 }
 0x100   :  { %v895_v63 = vand.u32 4294901760, %v894_v55  ;;  %v902_v11 = vand.u32 4294901760, %v901_v9  ;;  %v2243_v9 = vpack.c.bf16 %v2704_v56, %v2698_v48  ;;  %v2300_v48 = vpack.c.bf16 %v893_v26, %v886_v18 }
 0x101   :  { %v909_v25 = vand.u32 4294901760, %v908_v10  ;;  %v937_v55 = vand.u32 4294901760, %v936_v13  ;;  %v2246_v10 = vpack.c.bf16 %v2709_v20, %v2706_v19  ;;  %v2303_v56 = vpack.c.bf16 %v907_v30, %v900_v2 }
 0x102   :  { %v2228_v34 = vpack.c.bf16 %v895_v63, %v888_v60  ;;  %v2240_v63 = vpack.c.bf16 %v2696_v42, %v2694_v33  ;;  %v2294_v33 = vpack.c.bf16 %v865_v49, %v858_v17  ;;  %v2297_v42 = vpack.c.bf16 %v879_v50, %v872_v7 }
 0x103   :  { %v2231_v16 = vpack.c.bf16 %v909_v25, %v902_v11  ;;  %v2237_v60 = vpack.c.bf16 %v937_v55, %v930_v59  ;;  %v2249_v11 = vpack.c.bf16 %v2715_v44, %v2713_v43  ;;  %v2252_v25 = vpack.c.bf16 %v2719_v27, %v2717_v14 }
 0x104   :  { %v3055_v19 = vand.u32 4294901760, %v2820_v4  ;;  %v3056_v20 = vand.u32 4294901760, %v2822_v29  ;;  %v3057_v44 = vand.u32 4294901760, %v2829_v39  ;;  %v3058_v14 = vand.u32 4294901760, %v2831_v40  ;;  %v1422_v4 = vld [vmem:[%s3047_s4] ss:$0 sm:$0xff] }
 0x106   :  { %v2306_v43 = vpack.c.bf16 %v3056_v20, %v3055_v19  ;;  %v2309_v27 = vpack.c.bf16 %v3058_v14, %v3057_v44 }
 0x1ce   :  { %v714_v22 = vpop.f32.mrb[0].mxu0 }
 0x1cf   :  { %v2916_v12 = vsub.f32 %v2559_v23, %v714_v22  ;;  %v1836_v13 = vpop.f32.mrb[1].mxu0  ;;  %v2288_v23 = vpack.c.bf16 %v837_v36, %v830_v35 }
 0x1d1   :  { %v719_v59 = vmul.f32 %v2916_v12, %v2916_v12 }
 0x1d3   :  { %v2920_v55 = vand.u32 4294901760, %v719_v59 }
 0x1d5   :  { %v818_v54 = vsub.f32 %v719_v59, %v2920_v55 }
 0x1d7   :  { %v819_v28 = vand.u32 4294901760, %v818_v54 }
 0x1d9   :  { %v820_v15 = vsub.f32 %v818_v54, %v819_v28 }
 0x1db   :  { %v821_v41 = vand.u32 4294901760, %v820_v15 }
 0x1dd   :  { %1870 = vmatmul.mubr.f32.vlgmr.msra.gmra.mrb[0].mxu1 %v821_v41 }
 0x1de   :  { %2217 = vmatpush3.bf16.msra.mxu1 %v2849_v46  ;;  %1904 = vmatprep.mubr.msk.f32.mxu1 %vm2468_vm0, %v2469_v1  ;;  %v2291_v46 = vpack.c.bf16 %v851_v24, %v844_v32 }
 0x1df   :  { %2218 = vmatprep.subr.bf16.mxu1 %v2467_v0 }
 0x1e2   :  { %2220 = vmatpush3.bf16.msra.mxu1 %v2219_v21 }
 0x1e3   :  { %2221 = vmatprep.subr.bf16.mxu1 %v2467_v0 }
 0x1e6   :  { %2223 = vmatpush3.bf16.msra.mxu1 %v2222_v52 }
 0x1e7   :  { %2224 = vmatprep.subr.bf16.mxu1 %v2467_v0 }
 0x1ea   :  { %2226 = vmatpush3.bf16.msra.mxu1 %v2225_v38 }
 0x1eb   :  { %2227 = vmatprep.subr.bf16.mxu1 %v2467_v0 }
 0x1ee   :  { %2229 = vmatpush3.bf16.msra.mxu1 %v2228_v34 }
 0x1ef   :  { %2230 = vmatprep.subr.bf16.mxu1 %v2467_v0 }
 0x1f2   :  { %2232 = vmatpush3.bf16.msra.mxu1 %v2231_v16 }
 0x1f3   :  { %2233 = vmatprep.subr.bf16.mxu1 %v2467_v0 }
 0x1f6   :  { %2235 = vmatpush3.bf16.msra.mxu1 %v2234_v58 }
 0x1f7   :  { %2236 = vmatprep.subr.bf16.mxu1 %v2467_v0 }
 0x1fa   :  { %2238 = vmatpush3.bf16.msra.mxu1 %v2237_v60 }
 0x1fb   :  { %2239 = vmatprep.subr.bf16.mxu1 %v2467_v0 }
 0x1fd   :  { %1905 = vmatmul.mubr.f32.vlgmr.msra.gmra.mrb[0].mxu1 %v2920_v55 }
 0x1fe   :  { %2241 = vmatpush3.bf16.msra.mxu1 %v2240_v63  ;;  %1939 = vmatprep.mubr.msk.f32.mxu1 %vm2468_vm0, %v2469_v1 }
 0x1ff   :  { %2242 = vmatprep.subr.bf16.mxu1 %v2467_v0 }
 0x202   :  { %2244 = vmatpush3.bf16.msra.mxu1 %v2243_v9 }
 0x203   :  { %2245 = vmatprep.subr.bf16.mxu1 %v2467_v0 }
 0x206   :  { %2247 = vmatpush3.bf16.msra.mxu1 %v2246_v10 }
 0x207   :  { %2248 = vmatprep.subr.bf16.mxu1 %v2467_v0 }
 0x20a   :  { %2250 = vmatpush3.bf16.msra.mxu1 %v2249_v11 }
 0x20b   :  { %2251 = vmatprep.subr.bf16.mxu1 %v2467_v0 }
 0x20e   :  { %2253 = vmatpush3.bf16.msra.mxu1 %v2252_v25 }
 0x20f   :  { %2254 = vmatprep.subr.bf16.mxu1 %v2467_v0 }
 0x212   :  { %2256 = vmatpush3.bf16.msra.mxu1 %v2255_v61 }
 0x213   :  { %2257 = vmatprep.subr.bf16.mxu1 %v2467_v0 }
 0x216   :  { %2259 = vmatpush3.bf16.msra.mxu1 %v2258_v57 }
 0x217   :  { %2260 = vmatprep.subr.bf16.mxu1 %v2467_v0 }
 0x21a   :  { %2262 = vmatpush3.bf16.msra.mxu1 %v2261_v6 }
 0x21b   :  { %2263 = vmatprep.subr.bf16.mxu1 %v2467_v0 }
 0x21d   :  { %1940 = vmatmul.mubr.f32.vlgmr.msra.gmra.mrb[0].mxu1 %v818_v54 }
 0x21e   :  { %2265 = vmatpush3.bf16.msra.mxu1 %v2692_v47  ;;  %1974 = vmatprep.mubr.msk.f32.mxu1 %vm2468_vm0, %v2469_v1 }
 0x21f   :  { %2266 = vmatprep.subr.bf16.mxu1 %v2467_v0 }
 0x222   :  { %2268 = vmatpush3.bf16.msra.mxu1 %v2702_v53 }
 0x223   :  { %2269 = vmatprep.subr.bf16.mxu1 %v2467_v0 }
 0x226   :  { %2271 = vmatpush3.bf16.msra.mxu1 %v2724_v5 }
 0x227   :  { %2272 = vmatprep.subr.bf16.mxu1 %v2467_v0 }
 0x22a   :  { %2274 = vmatpush3.bf16.msra.mxu1 %v2731_v8 }
 0x22b   :  { %2275 = vmatprep.subr.bf16.mxu1 %v2467_v0 }
 0x22e   :  { %2277 = vmatpush3.bf16.msra.mxu1 %v2738_v51 }
 0x22f   :  { %2278 = vmatprep.subr.bf16.mxu1 %v2467_v0 }
 0x232   :  { %2280 = vmatpush3.bf16.msra.mxu1 %v2809_v45 }
 0x233   :  { %2281 = vmatprep.subr.bf16.mxu1 %v2467_v0 }
 0x236   :  { %2283 = vmatpush3.bf16.msra.mxu1 %v2813_v62 }
 0x237   :  { %2284 = vmatprep.subr.bf16.mxu1 %v2467_v0 }
 0x23a   :  { %2286 = vmatpush3.bf16.msra.mxu1 %v2827_v37 }
 0x23b   :  { %2287 = vmatprep.subr.bf16.mxu1 %v2467_v0 }
 0x23d   :  { %1975 = vmatmul.mubr.f32.vlgmr.msra.gmra.mrb[0].mxu1 %v819_v28 }
 0x23e   :  { %2289 = vmatpush3.bf16.msra.mxu1 %v2288_v23  ;;  %2009 = vmatprep.mubr.msk.f32.mxu1 %vm2468_vm0, %v2469_v1 }
 0x23f   :  { %2290 = vmatprep.subr.bf16.mxu1 %v2467_v0 }
 0x242   :  { %2292 = vmatpush3.bf16.msra.mxu1 %v2291_v46 }
 0x243   :  { %2293 = vmatprep.subr.bf16.mxu1 %v2467_v0 }
 0x246   :  { %2295 = vmatpush3.bf16.msra.mxu1 %v2294_v33 }
 0x247   :  { %2296 = vmatprep.subr.bf16.mxu1 %v2467_v0 }
 0x24a   :  { %2298 = vmatpush3.bf16.msra.mxu1 %v2297_v42 }
 0x24b   :  { %2299 = vmatprep.subr.bf16.mxu1 %v2467_v0 }
 0x24e   :  { %2301 = vmatpush3.bf16.msra.mxu1 %v2300_v48 }
 0x24f   :  { %2302 = vmatprep.subr.bf16.mxu1 %v2467_v0 }
 0x252   :  { %2304 = vmatpush3.bf16.msra.mxu1 %v2303_v56 }
 0x253   :  { %2305 = vmatprep.subr.bf16.mxu1 %v2467_v0 }
 0x256   :  { %2307 = vmatpush3.bf16.msra.mxu1 %v2306_v43 }
 0x257   :  { %2308 = vmatprep.subr.bf16.mxu1 %v2467_v0 }
 0x25a   :  { %2310 = vmatpush3.bf16.msra.mxu1 %v2309_v27 }
 0x25b   :  { %2311 = vmatprep.subr.bf16.mxu1 %v2467_v0 }
 0x25d   :  { %2010 = vmatmul.mubr.f32.vlgmr.msra.gmra.mrb[0].mxu1 %v2920_v55 }
 0x25e   :  { %2313 = vmatpush3.bf16.msra.mxu1 %v2692_v47  ;;  %2044 = vmatprep.mubr.msk.f32.mxu1 %vm2468_vm0, %v2469_v1 }
 0x25f   :  { %2314 = vmatprep.subr.bf16.mxu1 %v2467_v0 }
 0x262   :  { %2316 = vmatpush3.bf16.msra.mxu1 %v2702_v53 }
 0x263   :  { %2317 = vmatprep.subr.bf16.mxu1 %v2467_v0 }
 0x266   :  { %2319 = vmatpush3.bf16.msra.mxu1 %v2724_v5 }
 0x267   :  { %2320 = vmatprep.subr.bf16.mxu1 %v2467_v0 }
 0x26a   :  { %2322 = vmatpush3.bf16.msra.mxu1 %v2731_v8 }
 0x26b   :  { %2323 = vmatprep.subr.bf16.mxu1 %v2467_v0 }
 0x26e   :  { %2325 = vmatpush3.bf16.msra.mxu1 %v2738_v51 }
 0x26f   :  { %2326 = vmatprep.subr.bf16.mxu1 %v2467_v0 }
 0x272   :  { %2328 = vmatpush3.bf16.msra.mxu1 %v2809_v45 }
 0x273   :  { %2329 = vmatprep.subr.bf16.mxu1 %v2467_v0 }
 0x276   :  { %2331 = vmatpush3.bf16.msra.mxu1 %v2813_v62 }
 0x277   :  { %2332 = vmatprep.subr.bf16.mxu1 %v2467_v0  ;;  %v1421_v0 = vld [vmem:[%s3046_s3] ss:$0 sm:$0xff] }
 0x278   :  { %v1394_v62 = vmul.f32 %v1421_v0, %v2916_v12 }
 0x27a   :  { %2334 = vmatpush3.bf16.msra.mxu1 %v2827_v37 }
 0x27d   :  { %2045 = vmatmul.mubr.f32.vlgmr.msra.gmra.mrb[0].mxu1 %v2920_v55 }
 0x350   :  { %v1373_v1 = vpop.f32.mrb[0].mxu1 }
 0x351   :  { %2364 = vrsqrt.f32 %v1373_v1  ;;  %v2046_v47 = vpop.f32.mrb[1].mxu1  ;;  %vm1379_vm1 = vcmp.eq.f32.partialorder %v1373_v1, inf  ;;  %v1382_v8 = vand.u32 2147483648, %v1373_v1  ;;  %vm1381_vm2 = vcmp.eq.f32.partialorder %v1373_v1, 0.0 }
 0x35b   :  { %v2365_v53 = vpop.eup %2364 }
 0x35c   :  { %v1378_v5 = vmul.f32 %v2365_v53, %v1373_v1 }
 0x35e   :  { %v1380_v51 = vsel %vm1379_vm1, %v1373_v1, %v1378_v5 }
 0x35f   :  { %v1383_v45 = vsel %vm1381_vm2, %v1382_v8, %v1380_v51 }
 0x360   :  { %v1384_v3 = vadd.f32 1e-06, %v1383_v45 }
 0x362   :  { %2366 = vrcp.f32 %v1384_v3 }
 0x36c   :  { %v2367_v31 = vpop.eup %2366 }
 0x36d   :  { %v1395_v29 = vmul.f32 %v2367_v31, %v1394_v62 }
 0x36f   :  { %v1403_v35 = vadd.f32 %v1422_v4, %v1395_v29 }
 0x371   :  { %1404 = vst [vmem:[#allocation8] sm:$0xff] %v1403_v35 }
 0x372   :  { %2445 = shalt.err (!%p2442_p0)
}
 0x373   :  { %s2446_s11 = scalar_lea.hbm %s3048_s5, 128 }
 0x374   :  { %p2447_p1 = scmp.ne.s32.totalorder %s3048_s5, %s2446_s11  ;;  %p2450_p2 = scmp.lt.u32.totalorder %s2446_s11, %s3048_s5 }
 0x376   :  { %p2452_p3 = pnand %p2450_p2, %p2447_p1 }
 0x378   :  { %2455 = shalt.err (!%p2452_p3)
}
 0x379   :  { %1414 = dma.vmem_to_hbm [thread:$0]  %s1412_s8, 128, %s3048_s5, [#allocation4]  }
 0x37a   :  { %2460 = dma.done.wait [#allocation4], 128  }
 0x37b   :  { %2461 = vsyncadd [#allocation4], 4294967168 }
 0x37c   :  { %1418 = vsyncpa [#allocation3], 1 }
 0x37d   :  { %1419 = vsyncpa [#allocation6], 1 }
 0x37e   :  { %1420 = vsyncpa [#allocation4], 1 }

</bundles_post_ra>
